<compile_context>
chip_gen: v5e
topology: v5e:2x2
jax: 0.10.0
libtpu: 0.0.40
codegen_flags: <defaults>
</compile_context>

<pallas_src>
import functools

import jax
import jax.numpy as jnp
from jax.experimental import pallas as pl
from jax.experimental.pallas import tpu as pltpu


def _dwconv_bn_relu_kernel(x_ref, mask_ref, wtap_ref, wblk_ref, bias_ref,
                           o_ref, *, shifts):
    """Fused depthwise conv + pointwise conv + BN(+bias) + ReLU, one block.

    x_ref    : (N*Cin, HW)      batch packed into sublanes, spatial in lanes
    mask_ref : (ks*ks, HW)      per-tap boundary-validity masks (shared)
    wtap_ref : (N*Cin, ks*ks)   depthwise tap weights per packed row
    wblk_ref : (N*Cout, N*Cin)  block-diagonal pointwise weights, BN scale folded
    bias_ref : (N*Cout, 1)      folded BN bias (tiled over batch)
    o_ref    : (N*Cout, HW)     lane-dense output
    """
    x = x_ref[...]                                          # (N*Cin, HW) f32

    # --- depthwise ks x ks conv: lane roll (XLU) + masked FMA (VPU) per tap ---
    acc = None
    for t, s in enumerate(shifts):
        xs = x if s == 0 else pltpu.roll(x, shift=s, axis=1)
        term = (xs * mask_ref[t:t + 1, :]) * wtap_ref[:, t:t + 1]
        acc = term if acc is None else acc + term           # init from 1st tap

    # --- pointwise 1x1 conv (+ folded BN scale) as a single MXU matmul ---
    y = jnp.dot(wblk_ref[...], acc, preferred_element_type=jnp.float32)
    y = y + bias_ref[...]                                   # folded BN bias

    # --- ReLU + lane-dense store (HW lanes, multiple of 128) ---
    o_ref[...] = jnp.maximum(y, 0.0).astype(o_ref.dtype)


def dwconv_bn_relu(x_nchw, w_dw, w_pt, gamma, beta, run_mean, run_var,
                   *, ks=3, stride=1, padding=1, eps=1e-5):
    """x_nchw: (N, Cin, H, W). w_dw: (Cin, 1, ks, ks). w_pt: (Cout, Cin, 1, 1)."""
    assert stride == 1, "only stride=1 implemented"
    N, Cin, H, W = x_nchw.shape
    Cout = w_pt.shape[0]
    HW = H * W
    NCin, NCout = N * Cin, N * Cout

    # Batch packed into sublanes, spatial flattened into lanes (reshape only).
    x_flat = x_nchw.reshape(NCin, HW).astype(jnp.float32)

    # Per-tap lane shifts + shared boundary-validity masks (zero padding is
    # handled by masking, so circular wrap from the roll only hits masked lanes).
    hh = jnp.arange(H)[:, None]
    ww = jnp.arange(W)[None, :]
    shifts, masks = [], []
    for dh in range(ks):
        for dw in range(ks):
            oh, ow = dh - padding, dw - padding
            valid = (hh + oh >= 0) & (hh + oh < H) & (ww + ow >= 0) & (ww + ow < W)
            masks.append(valid.reshape(HW))
            shifts.append(int((-(oh * W + ow)) % HW))
    mask_arr = jnp.stack(masks).astype(jnp.float32)                 # (ks*ks, HW)

    # Depthwise tap weights per packed row (channel weights replicated over N).
    wdw_taps = w_dw[:, 0, :, :].reshape(Cin, ks * ks).astype(jnp.float32)
    wtap = jnp.tile(wdw_taps, (N, 1))                               # (N*Cin, ks*ks)

    # Fold eval-mode BatchNorm into the pointwise weights + per-channel bias,
    # then build a block-diagonal weight so one MXU matmul over the packed
    # (N*Cin, HW) activations never mixes batch elements.
    scale = gamma / jnp.sqrt(run_var + eps)                         # (Cout,)
    wpt_scaled = (w_pt[:, :, 0, 0] * scale[:, None]).astype(jnp.float32)
    wblk = jnp.kron(jnp.eye(N, dtype=jnp.float32), wpt_scaled)      # (N*Cout, N*Cin)
    bias = jnp.tile((beta - run_mean * scale).reshape(Cout, 1),
                    (N, 1)).astype(jnp.float32)                     # (N*Cout, 1)

    kernel = functools.partial(_dwconv_bn_relu_kernel, shifts=tuple(shifts))

    out_flat = pl.pallas_call(
        kernel,
        out_shape=jax.ShapeDtypeStruct((NCout, HW), jnp.float32),
        grid_spec=pltpu.PrefetchScalarGridSpec(
            num_scalar_prefetch=0,
            grid=(1,),                     # whole problem = one grid step
            in_specs=[
                pl.BlockSpec((NCin, HW), lambda i: (0, 0)),
                pl.BlockSpec((ks * ks, HW), lambda i: (0, 0)),
                pl.BlockSpec((NCin, ks * ks), lambda i: (0, 0)),
                pl.BlockSpec((NCout, NCin), lambda i: (0, 0)),
                pl.BlockSpec((NCout, 1), lambda i: (0, 0)),
            ],
            out_specs=pl.BlockSpec((NCout, HW), lambda i: (0, 0)),
        ),
        compiler_params=pltpu.CompilerParams(
            dimension_semantics=("arbitrary",)),   # single step; no TC split
    )(x_flat, mask_arr, wtap, wblk, bias)

    return out_flat.reshape(N, Cout, H, W)


def _reference(x_nchw, w_dw, w_pt, gamma, beta, run_mean, run_var, eps=1e-5):
    """Pure-JAX reference (lax.conv) to sanity-check the kernel."""
    y = jax.lax.conv_general_dilated(
        x_nchw, w_dw, window_strides=(1, 1), padding=((1, 1), (1, 1)),
        dimension_numbers=("NCHW", "OIHW", "NCHW"),
        feature_group_count=x_nchw.shape[1])
    y = jax.lax.conv_general_dilated(
        y, w_pt, window_strides=(1, 1), padding=((0, 0), (0, 0)),
        dimension_numbers=("NCHW", "OIHW", "NCHW"))
    s = (gamma / jnp.sqrt(run_var + eps)).reshape(1, -1, 1, 1)
    b = (beta - run_mean * gamma / jnp.sqrt(run_var + eps)).reshape(1, -1, 1, 1)
    return jnp.maximum(y * s + b, 0.0)


if __name__ == "__main__":
    key = jax.random.PRNGKey(0)
    k_x, k_dw, k_pt = jax.random.split(key, 3)

    N, Cin, Cout, H, W, ks = 2, 4, 8, 16, 16, 3

    x = jax.random.normal(k_x, (N, Cin, H, W), jnp.float32)

    # Deterministic kaiming_normal_(a=1): std = sqrt(2 / (1 + a^2) / fan_in)
    fan_in_dw = 1 * ks * ks          # groups=Cin -> in_chan/groups = 1
    w_dw = jax.random.normal(k_dw, (Cin, 1, ks, ks), jnp.float32) * (1.0 / fan_in_dw) ** 0.5
    fan_in_pt = Cin * 1 * 1
    w_pt = jax.random.normal(k_pt, (Cout, Cin, 1, 1), jnp.float32) * (1.0 / fan_in_pt) ** 0.5

    # BatchNorm2d parameters at init (eval-mode semantics).
    gamma = jnp.ones((Cout,), jnp.float32)
    beta = jnp.zeros((Cout,), jnp.float32)
    run_mean = jnp.zeros((Cout,), jnp.float32)
    run_var = jnp.ones((Cout,), jnp.float32)

    out = dwconv_bn_relu(x, w_dw, w_pt, gamma, beta, run_mean, run_var)
    out = jax.block_until_ready(out)

    ref = _reference(x, w_dw, w_pt, gamma, beta, run_mean, run_var)
    assert out.shape == (N, Cout, H, W), out.shape
    assert jnp.allclose(out, ref, atol=1e-4, rtol=1e-4), float(jnp.max(jnp.abs(out - ref)))

    print("KERNEL_OK")
</pallas_src>

<mosaic_0001>
module attributes {stable_mosaic.version = 11 : i64} {
  func.func @_dwconv_bn_relu_kernel(%arg0: i32, %arg1: memref<8x256xf32, #tpu.memory_space<vmem>>, %arg2: memref<9x256xf32, #tpu.memory_space<vmem>>, %arg3: memref<8x9xf32, #tpu.memory_space<vmem>>, %arg4: memref<16x8xf32, #tpu.memory_space<vmem>>, %arg5: memref<16x1xf32, #tpu.memory_space<vmem>>, %arg6: memref<16x256xf32, #tpu.memory_space<vmem>>) attributes {dimension_semantics = [#tpu.dimension_semantics<arbitrary>], iteration_bounds = array<i64: 1>, scalar_prefetch = 0 : i64, scratch_operands = 0 : i64, tpu.core_type = #tpu.core_type<tc>, window_params = [{pipeline_mode = #tpu.pipeline_mode<synchronous>, transform_indices = @transform_0, window_bounds = array<i64: 8, 256>}, {pipeline_mode = #tpu.pipeline_mode<synchronous>, transform_indices = @transform_1, window_bounds = array<i64: 9, 256>}, {pipeline_mode = #tpu.pipeline_mode<synchronous>, transform_indices = @transform_2, window_bounds = array<i64: 8, 9>}, {pipeline_mode = #tpu.pipeline_mode<synchronous>, transform_indices = @transform_3, window_bounds = array<i64: 16, 8>}, {pipeline_mode = #tpu.pipeline_mode<synchronous>, transform_indices = @transform_4, window_bounds = array<i64: 16, 1>}, {pipeline_mode = #tpu.pipeline_mode<synchronous>, transform_indices = @transform_5, window_bounds = array<i64: 16, 256>}]} {
    %c0 = arith.constant 0 : index
    %c0_0 = arith.constant 0 : index
    %0 = vector.load %arg1[%c0, %c0_0] : memref<8x256xf32, #tpu.memory_space<vmem>>, vector<8x256xf32>
    %c17_i32 = arith.constant 17 : i32
    %1 = tpu.dynamic_rotate %0 by %c17_i32 dim 1 : vector<8x256xf32>, i32 -> vector<8x256xf32>
    %c0_1 = arith.constant 0 : index
    %c0_2 = arith.constant 0 : index
    %2 = vector.load %arg2[%c0_1, %c0_2] : memref<9x256xf32, #tpu.memory_space<vmem>>, vector<1x256xf32>
    %3 = vector.broadcast %2 : vector<1x256xf32> to vector<8x256xf32>
    %4 = arith.mulf %1, %3 : vector<8x256xf32>
    %c0_3 = arith.constant 0 : index
    %c0_4 = arith.constant 0 : index
    %5 = vector.load %arg3[%c0_3, %c0_4] : memref<8x9xf32, #tpu.memory_space<vmem>>, vector<8x1xf32>
    %6 = vector.broadcast %5 : vector<8x1xf32> to vector<8x256xf32>
    %7 = arith.mulf %4, %6 : vector<8x256xf32>
    %c16_i32 = arith.constant 16 : i32
    %8 = tpu.dynamic_rotate %0 by %c16_i32 dim 1 : vector<8x256xf32>, i32 -> vector<8x256xf32>
    %c1 = arith.constant 1 : index
    %c0_5 = arith.constant 0 : index
    %9 = vector.load %arg2[%c1, %c0_5] : memref<9x256xf32, #tpu.memory_space<vmem>>, vector<1x256xf32>
    %10 = vector.broadcast %9 : vector<1x256xf32> to vector<8x256xf32>
    %11 = arith.mulf %8, %10 : vector<8x256xf32>
    %c0_6 = arith.constant 0 : index
    %c1_7 = arith.constant 1 : index
    %12 = vector.load %arg3[%c0_6, %c1_7] : memref<8x9xf32, #tpu.memory_space<vmem>>, vector<8x1xf32>
    %13 = vector.broadcast %12 : vector<8x1xf32> to vector<8x256xf32>
    %14 = arith.mulf %11, %13 : vector<8x256xf32>
    %15 = arith.addf %7, %14 : vector<8x256xf32>
    %c15_i32 = arith.constant 15 : i32
    %16 = tpu.dynamic_rotate %0 by %c15_i32 dim 1 : vector<8x256xf32>, i32 -> vector<8x256xf32>
    %c2 = arith.constant 2 : index
    %c0_8 = arith.constant 0 : index
    %17 = vector.load %arg2[%c2, %c0_8] : memref<9x256xf32, #tpu.memory_space<vmem>>, vector<1x256xf32>
    %18 = vector.broadcast %17 : vector<1x256xf32> to vector<8x256xf32>
    %19 = arith.mulf %16, %18 : vector<8x256xf32>
    %c0_9 = arith.constant 0 : index
    %c2_10 = arith.constant 2 : index
    %20 = vector.load %arg3[%c0_9, %c2_10] : memref<8x9xf32, #tpu.memory_space<vmem>>, vector<8x1xf32>
    %21 = vector.broadcast %20 : vector<8x1xf32> to vector<8x256xf32>
    %22 = arith.mulf %19, %21 : vector<8x256xf32>
    %23 = arith.addf %15, %22 : vector<8x256xf32>
    %c1_i32 = arith.constant 1 : i32
    %24 = tpu.dynamic_rotate %0 by %c1_i32 dim 1 : vector<8x256xf32>, i32 -> vector<8x256xf32>
    %c3 = arith.constant 3 : index
    %c0_11 = arith.constant 0 : index
    %25 = vector.load %arg2[%c3, %c0_11] : memref<9x256xf32, #tpu.memory_space<vmem>>, vector<1x256xf32>
    %26 = vector.broadcast %25 : vector<1x256xf32> to vector<8x256xf32>
    %27 = arith.mulf %24, %26 : vector<8x256xf32>
    %c0_12 = arith.constant 0 : index
    %c3_13 = arith.constant 3 : index
    %28 = vector.load %arg3[%c0_12, %c3_13] : memref<8x9xf32, #tpu.memory_space<vmem>>, vector<8x1xf32>
    %29 = vector.broadcast %28 : vector<8x1xf32> to vector<8x256xf32>
    %30 = arith.mulf %27, %29 : vector<8x256xf32>
    %31 = arith.addf %23, %30 : vector<8x256xf32>
    %c4 = arith.constant 4 : index
    %c0_14 = arith.constant 0 : index
    %32 = vector.load %arg2[%c4, %c0_14] : memref<9x256xf32, #tpu.memory_space<vmem>>, vector<1x256xf32>
    %33 = vector.broadcast %32 : vector<1x256xf32> to vector<8x256xf32>
    %34 = arith.mulf %0, %33 : vector<8x256xf32>
    %c0_15 = arith.constant 0 : index
    %c4_16 = arith.constant 4 : index
    %35 = vector.load %arg3[%c0_15, %c4_16] : memref<8x9xf32, #tpu.memory_space<vmem>>, vector<8x1xf32>
    %36 = vector.broadcast %35 : vector<8x1xf32> to vector<8x256xf32>
    %37 = arith.mulf %34, %36 : vector<8x256xf32>
    %38 = arith.addf %31, %37 : vector<8x256xf32>
    %c255_i32 = arith.constant 255 : i32
    %39 = tpu.dynamic_rotate %0 by %c255_i32 dim 1 : vector<8x256xf32>, i32 -> vector<8x256xf32>
    %c5 = arith.constant 5 : index
    %c0_17 = arith.constant 0 : index
    %40 = vector.load %arg2[%c5, %c0_17] : memref<9x256xf32, #tpu.memory_space<vmem>>, vector<1x256xf32>
    %41 = vector.broadcast %40 : vector<1x256xf32> to vector<8x256xf32>
    %42 = arith.mulf %39, %41 : vector<8x256xf32>
    %c0_18 = arith.constant 0 : index
    %c5_19 = arith.constant 5 : index
    %43 = vector.load %arg3[%c0_18, %c5_19] : memref<8x9xf32, #tpu.memory_space<vmem>>, vector<8x1xf32>
    %44 = vector.broadcast %43 : vector<8x1xf32> to vector<8x256xf32>
    %45 = arith.mulf %42, %44 : vector<8x256xf32>
    %46 = arith.addf %38, %45 : vector<8x256xf32>
    %c241_i32 = arith.constant 241 : i32
    %47 = tpu.dynamic_rotate %0 by %c241_i32 dim 1 : vector<8x256xf32>, i32 -> vector<8x256xf32>
    %c6 = arith.constant 6 : index
    %c0_20 = arith.constant 0 : index
    %48 = vector.load %arg2[%c6, %c0_20] : memref<9x256xf32, #tpu.memory_space<vmem>>, vector<1x256xf32>
    %49 = vector.broadcast %48 : vector<1x256xf32> to vector<8x256xf32>
    %50 = arith.mulf %47, %49 : vector<8x256xf32>
    %c0_21 = arith.constant 0 : index
    %c6_22 = arith.constant 6 : index
    %51 = vector.load %arg3[%c0_21, %c6_22] : memref<8x9xf32, #tpu.memory_space<vmem>>, vector<8x1xf32>
    %52 = vector.broadcast %51 : vector<8x1xf32> to vector<8x256xf32>
    %53 = arith.mulf %50, %52 : vector<8x256xf32>
    %54 = arith.addf %46, %53 : vector<8x256xf32>
    %c240_i32 = arith.constant 240 : i32
    %55 = tpu.dynamic_rotate %0 by %c240_i32 dim 1 : vector<8x256xf32>, i32 -> vector<8x256xf32>
    %c7 = arith.constant 7 : index
    %c0_23 = arith.constant 0 : index
    %56 = vector.load %arg2[%c7, %c0_23] : memref<9x256xf32, #tpu.memory_space<vmem>>, vector<1x256xf32>
    %57 = vector.broadcast %56 : vector<1x256xf32> to vector<8x256xf32>
    %58 = arith.mulf %55, %57 : vector<8x256xf32>
    %c0_24 = arith.constant 0 : index
    %c7_25 = arith.constant 7 : index
    %59 = vector.load %arg3[%c0_24, %c7_25] : memref<8x9xf32, #tpu.memory_space<vmem>>, vector<8x1xf32>
    %60 = vector.broadcast %59 : vector<8x1xf32> to vector<8x256xf32>
    %61 = arith.mulf %58, %60 : vector<8x256xf32>
    %62 = arith.addf %54, %61 : vector<8x256xf32>
    %c239_i32 = arith.constant 239 : i32
    %63 = tpu.dynamic_rotate %0 by %c239_i32 dim 1 : vector<8x256xf32>, i32 -> vector<8x256xf32>
    %c8 = arith.constant 8 : index
    %c0_26 = arith.constant 0 : index
    %64 = vector.load %arg2[%c8, %c0_26] : memref<9x256xf32, #tpu.memory_space<vmem>>, vector<1x256xf32>
    %65 = vector.broadcast %64 : vector<1x256xf32> to vector<8x256xf32>
    %66 = arith.mulf %63, %65 : vector<8x256xf32>
    %c0_27 = arith.constant 0 : index
    %c8_28 = arith.constant 8 : index
    %67 = vector.load %arg3[%c0_27, %c8_28] : memref<8x9xf32, #tpu.memory_space<vmem>>, vector<8x1xf32>
    %68 = vector.broadcast %67 : vector<8x1xf32> to vector<8x256xf32>
    %69 = arith.mulf %66, %68 : vector<8x256xf32>
    %70 = arith.addf %62, %69 : vector<8x256xf32>
    %c0_29 = arith.constant 0 : index
    %c0_30 = arith.constant 0 : index
    %71 = vector.load %arg4[%c0_29, %c0_30] : memref<16x8xf32, #tpu.memory_space<vmem>>, vector<16x8xf32>
    %cst = arith.constant dense<0.000000e+00> : vector<16x256xf32>
    %72 = tpu.matmul %71, %70, %cst {dimension_numbers = #tpu.dot_dimension_numbers<[1], [0], [0], [1], [0, 0, 1, 1], [], []>} : vector<16x8xf32>, vector<8x256xf32>, vector<16x256xf32> -> vector<16x256xf32>
    %c0_31 = arith.constant 0 : index
    %c0_32 = arith.constant 0 : index
    %73 = vector.load %arg5[%c0_31, %c0_32] : memref<16x1xf32, #tpu.memory_space<vmem>>, vector<16x1xf32>
    %74 = vector.broadcast %73 : vector<16x1xf32> to vector<16x256xf32>
    %75 = arith.addf %72, %74 : vector<16x256xf32>
    %cst_33 = arith.constant 0.000000e+00 : f32
    %76 = vector.broadcast %cst_33 : f32 to vector<16x256xf32>
    %77 = arith.maximumf %75, %76 : vector<16x256xf32>
    %c0_34 = arith.constant 0 : index
    %c0_35 = arith.constant 0 : index
    %78 = vector.load %arg6[%c0_34, %c0_35] : memref<16x256xf32, #tpu.memory_space<vmem>>, vector<16x256xf32>
    tpu.vector_store %arg6[%c0_34, %c0_35], %77 {strides = array<i32>} : memref<16x256xf32, #tpu.memory_space<vmem>>, vector<16x256xf32>,
    return
  }
  func.func @transform_0(%arg0: i32) -> (i32, i32) {
    %c0_i32 = arith.constant 0 : i32
    %c0_i32_0 = arith.constant 0 : i32
    %c0_i32_1 = arith.constant 0 : i32
    return %c0_i32, %c0_i32_0 : i32, i32
  }
  func.func @transform_1(%arg0: i32) -> (i32, i32) {
    %c0_i32 = arith.constant 0 : i32
    %c0_i32_0 = arith.constant 0 : i32
    %c0_i32_1 = arith.constant 0 : i32
    return %c0_i32, %c0_i32_0 : i32, i32
  }
  func.func @transform_2(%arg0: i32) -> (i32, i32) {
    %c0_i32 = arith.constant 0 : i32
    %c0_i32_0 = arith.constant 0 : i32
    %c0_i32_1 = arith.constant 0 : i32
    return %c0_i32, %c0_i32_0 : i32, i32
  }
  func.func @transform_3(%arg0: i32) -> (i32, i32) {
    %c0_i32 = arith.constant 0 : i32
    %c0_i32_0 = arith.constant 0 : i32
    %c0_i32_1 = arith.constant 0 : i32
    return %c0_i32, %c0_i32_0 : i32, i32
  }
  func.func @transform_4(%arg0: i32) -> (i32, i32) {
    %c0_i32 = arith.constant 0 : i32
    %c0_i32_0 = arith.constant 0 : i32
    %c0_i32_1 = arith.constant 0 : i32
    return %c0_i32, %c0_i32_0 : i32, i32
  }
  func.func @transform_5(%arg0: i32) -> (i32, i32) {
    %c0_i32 = arith.constant 0 : i32
    %c0_i32_0 = arith.constant 0 : i32
    %c0_i32_1 = arith.constant 0 : i32
    return %c0_i32, %c0_i32_0 : i32, i32
  }
}

</mosaic_0001>

<bundles_post_ra>
// kernel: tpu_custom_call.1
= control target key start
LH: loop header
LB: loop body
LE: loop exit
PB: predicated region body
PF: predicated region fallthrough
CT: control target
= control target key end

     0   :  { %10 = vsyncpa [#allocation3], 0  ;;  %s618_s0 = inlined_call_operand.hbm [shape: f32[8,256], index: 0, kind: input, shape index: {}]   ;;  %s619_s1 = inlined_call_operand.vmem [shape: f32[9,256], index: 1, kind: input, shape index: {}]   ;;  %s620_s2 = inlined_call_operand.vmem [shape: f32[8,9], index: 2, kind: input, shape index: {}]   ;;  %s621_s3 = inlined_call_operand.vmem [shape: f32[16,8], index: 3, kind: input, shape index: {}]   ;;  %s622_s4 = inlined_call_operand.vmem [shape: f32[16,1], index: 4, kind: input, shape index: {}]   ;;  %s623_s5 = inlined_call_operand.hbm [shape: f32[16,256], index: 5, kind: output, shape index: {}]  }
   0x1   :  { %11 = vsyncpa [#allocation4], 0  ;;  %s17_s20 = sshll.u32 %s618_s0, 4  ;;  %s437_s21 = smov [#allocation2]   ;;  %s18_s20 = int_to_ptr.hbm [resolvable:$true] %s17_s20 }
   0x2   :  { %s19_s22 = sshll.u32 %s437_s21, 4  ;;  %s20_s22 = int_to_ptr.vmem [resolvable:$true] %s19_s22 }
   0x3   :  { %22 = dma.hbm_to_vmem [thread:$0]  %s18_s20, 256, %s20_s22, [#allocation3]  }
   0x4   :  { %433 = dma.done.wait [#allocation3], 256  }
   0x5   :  { %434 = vsyncadd [#allocation3], 4294967040  ;;  %v438_v0 = vmov 3   ;;  %v439_v1 = vmov 1   ;;  %v440_v2 = vmov 2   ;;  %v490_v3 = vld [vmem:[#allocation2] sm:$0xff]  ;;  %v41_v27 = vlaneseq }
   0x6   :  { %377 = vset.pattern.permute.xlu0 %v438_v0  ;;  %375 = vset.pattern.permute.xlu1 %v439_v1  ;;  %s441_s23 = smov 16   ;;  %s442_s0 = smov 17   ;;  %v496_v4 = vld [vmem:[#allocation2 + $0x8] sm:$0xff]  ;;  %v54_v5 = vld [vmem:[%s620_s2] sm:$0xff]  ;;  %v445_v6 = vmov 0   ;;  %v446_v7 = vmov 4  }
   0x7   :  { %376 = vset.pattern.permute.xlu2 %v440_v2  ;;  %62 = vrot.lane.b32.xlu1 %v490_v3, %s441_s23  ;;  %s443_s24 = smov 15   ;;  %s444_s27 = smov 1   ;;  %v449_v8 = vmov 8   ;;  %v451_v9 = vmov 5   ;;  %v249_v10 = vld [vmem:[%s622_s4] sm:$0xff]  ;;  %v453_v11 = vmov 6  }
   0x8   :  { %37 = vrot.lane.b32.xlu0 %v490_v3, %s442_s0  ;;  %86 = vrot.lane.b32.xlu2 %v490_v3, %s443_s24  ;;  %s447_s28 = smov 127   ;;  %s448_s29 = smov 113   ;;  %v454_v12 = vmov 7   ;;  %v526_v29 = vand.u32 127, %v41_v27  ;;  %v250_v41 = vld [vmem:[%s622_s4 + $0x8] sm:$0xff]  ;;  %vm261_vm8 = vcmask 64512  }
   0x9   :  { %s450_s2 = smov 112   ;;  %s452_s30 = smov 111   ;;  %v46_v30 = vld [vmem:[%s619_s1] ss:$8 sm:$0x3] }
   0xa   :  { %vm43_vm0 = vcmp.lt.s32.totalorder %v526_v29, 17  ;;  %v341_v32 = vld [vmem:[%s619_s1 + $0x1] ss:$8 sm:$0x3]  ;;  %vm66_vm1 = vcmp.lt.s32.totalorder %v526_v29, 16  ;;  %v48_v35 = vperm.slane %v46_v30, 0 }
   0xb   :  { %v342_v34 = vld [vmem:[%s619_s1 + $0x2] ss:$8 sm:$0x3]  ;;  %v49_v36 = vperm.slane %v46_v30, 1  ;;  %vm90_vm2 = vcmp.lt.s32.totalorder %v526_v29, 15  ;;  %v72_v39 = vperm.slane %v341_v32, 0 }
   0xc   :  { %v73_v40 = vperm.slane %v341_v32, 1  ;;  %v96_v42 = vperm.slane %v342_v34, 0  ;;  %v97_v43 = vperm.slane %v342_v34, 1  ;;  %vm114_vm3 = vcmp.lt.s32.totalorder %v526_v29, 1  ;;  %s328_s7 = sshll.u32 %s623_s5, 4  ;;  %s456_s8 = smov 256   ;;  %s329_s7 = int_to_ptr.hbm [resolvable:$true] %s328_s7 }
   0xd   :  { %v343_v51 = vld [vmem:[%s619_s1 + $0x3] ss:$8 sm:$0x3]  ;;  %v344_v56 = vld [vmem:[%s619_s1 + $0x4] ss:$8 sm:$0x3] }
   0xe   :  { %v345_v60 = vld [vmem:[%s619_s1 + $0x5] ss:$8 sm:$0x3]  ;;  %v120_v63 = vperm.slane %v343_v51, 0  ;;  %v121_v0 = vperm.slane %v343_v51, 1  ;;  %vm155_vm4 = vcmp.lt.s32.totalorder %v526_v29, 127 }
   0xf   :  { %64 = vrot.lane.b32.xlu1 %v496_v4, %s441_s23  ;;  %vm179_vm5 = vcmp.lt.s32.totalorder %v526_v29, 113  ;;  %vm203_vm6 = vcmp.lt.s32.totalorder %v526_v29, 112  ;;  %v348_v27 = vld [vmem:[%s619_s1 + $0x10] ss:$8 sm:$0x3]  ;;  %vm227_vm7 = vcmp.lt.s32.totalorder %v526_v29, 111 }
  0x10   :  { %39 = vrot.lane.b32.xlu0 %v496_v4, %s442_s0  ;;  %88 = vrot.lane.b32.xlu2 %v496_v4, %s443_s24 }
  0x17   :  { %79 = vperm.xlu1 %375, %v54_v5  }
  0x18   :  { %127 = vperm.xlu0 %377, %v54_v5   ;;  %110 = vrot.lane.b32.xlu2 %v490_v3, %s444_s27 }
  0x1f   :  { %112 = vrot.lane.b32.xlu1 %v496_v4, %s444_s27 }
  0x20   :  { %378 = vset.pattern.permute.xlu0 %v445_v6  ;;  %103 = vperm.xlu2 %376, %v54_v5  }
  0x21   :  { %57 = vperm.xlu0 %378, %v54_v5   ;;  %379 = vset.pattern.permute.xlu1 %v446_v7  ;;  %v138_v7 = vperm.slane %v344_v56, 1 }
  0x27   :  { %151 = vrot.lane.b32.xlu1 %v490_v3, %s447_s28 }
  0x28   :  { %153 = vrot.lane.b32.xlu2 %v496_v4, %s447_s28 }
  0x29   :  { %177 = vrot.lane.b32.xlu0 %v496_v4, %s448_s29  ;;  %383 = vset.pattern.permute.xlu2 %v449_v8 }
  0x2f   :  { %144 = vperm.xlu1 %379, %v54_v5  }
  0x30   :  { %175 = vrot.lane.b32.xlu2 %v490_v3, %s448_s29 }
  0x31   :  { %201 = vrot.lane.b32.xlu0 %v496_v4, %s450_s2 }
  0x37   :  { %380 = vset.pattern.permute.xlu1 %v451_v9 }
  0x38   :  { %168 = vperm.xlu1 %380, %v54_v5   ;;  %199 = vrot.lane.b32.xlu2 %v490_v3, %s450_s2 }
  0x39   :  { %225 = vrot.lane.b32.xlu0 %v496_v4, %s452_s30 }
  0x40   :  { %381 = vset.pattern.permute.xlu1 %v453_v11  ;;  %223 = vrot.lane.b32.xlu2 %v490_v3, %s452_s30  ;;  %v161_v11 = vperm.slane %v345_v60, 0 }
  0x41   :  { %253 = vperm.xlu0 %378, %v249_v10   ;;  %192 = vperm.xlu1 %381, %v54_v5  }
  0x48   :  { %240 = vperm.xlu2 %383, %v54_v5  }
  0x49   :  { %382 = vset.pattern.permute.xlu1 %v454_v12  ;;  %v347_v12 = vld [vmem:[%s619_s1 + $0x7] ss:$8 sm:$0x3] }
  0x4a   :  { %216 = vperm.xlu1 %382, %v54_v5   ;;  %v346_v5 = vld [vmem:[%s619_s1 + $0x6] ss:$8 sm:$0x3] }
  0x52   :  { %384 = vset.pattern.permute.xlu1 %v445_v6  ;;  %v137_v6 = vperm.slane %v344_v56, 0 }
  0x53   :  { %258 = vperm.xlu1 %384, %v250_v41  }
  0x62   :  { %v87_v13 = vpop.permute.xlu2 %86 }
  0x6a   :  { %v89_v14 = vpop.permute.xlu2 %88 }
  0x6b   :  { %v91_v46 = vsel %vm90_vm2, %v87_v13, %v89_v14  ;;  %v92_v47 = vsel %vm90_vm2, %v89_v14, %v87_v13 }
  0x6c   :  { %v100_v58 = vmul.f32 %v96_v42, %v92_v47  ;;  %v101_v59 = vmul.f32 %v97_v43, %v91_v46 }
  0x72   :  { %v111_v18 = vpop.permute.xlu2 %110 }
  0x79   :  { %v63_v15 = vpop.permute.xlu1 %62 }
  0x7a   :  { %v38_v16 = vpop.permute.xlu0 %37  ;;  %v104_v21 = vpop.permute.xlu2 %103 }
  0x7b   :  { %v106_v13 = vmul.f32 %v104_v21, %v100_v58  ;;  %v107_v14 = vmul.f32 %v104_v21, %v101_v59 }
  0x81   :  { %v65_v17 = vpop.permute.xlu1 %64 }
  0x82   :  { %v40_v19 = vpop.permute.xlu0 %39  ;;  %v520_v24 = vpop.permute.xlu2 %153  ;;  %v67_v44 = vsel %vm66_vm1, %v63_v15, %v65_v17  ;;  %v68_v45 = vsel %vm66_vm1, %v65_v17, %v63_v15  ;;  %v162_v15 = vperm.slane %v345_v60, 1 }
  0x83   :  { %v44_v37 = vsel %vm43_vm0, %v38_v16, %v40_v19  ;;  %v45_v38 = vsel %vm43_vm0, %v40_v19, %v38_v16  ;;  %v76_v52 = vmul.f32 %v72_v39, %v68_v45  ;;  %v77_v53 = vmul.f32 %v73_v40, %v67_v44 }
  0x84   :  { %v52_v48 = vmul.f32 %v48_v35, %v45_v38  ;;  %v53_v49 = vmul.f32 %v49_v36, %v44_v37  ;;  %v186_v19 = vperm.slane %v346_v5, 1  ;;  %v210_v36 = vperm.slane %v347_v12, 1 }
  0x89   :  { %v80_v20 = vpop.permute.xlu1 %79 }
  0x8a   :  { %v518_v22 = vpop.permute.xlu0 %127  ;;  %v524_v28 = vpop.permute.xlu2 %175  ;;  %v82_v61 = vmul.f32 %v80_v20, %v76_v52  ;;  %v83_v62 = vmul.f32 %v80_v20, %v77_v53  ;;  %v142_v20 = vmul.f32 %v138_v7, %v496_v4 }
  0x91   :  { %v113_v23 = vpop.permute.xlu1 %112 }
  0x92   :  { %v547_v50 = vpop.permute.xlu2 %199  ;;  %v115_v1 = vsel %vm114_vm3, %v111_v18, %v113_v23  ;;  %v116_v2 = vsel %vm114_vm3, %v113_v23, %v111_v18  ;;  %v185_v18 = vperm.slane %v346_v5, 0  ;;  %v141_v23 = vmul.f32 %v137_v6, %v490_v3 }
  0x93   :  { %v58_v25 = vpop.permute.xlu0 %57  ;;  %v124_v16 = vmul.f32 %v120_v63, %v116_v2  ;;  %v125_v17 = vmul.f32 %v121_v0, %v115_v1 }
  0x94   :  { %v60_v54 = vmul.f32 %v58_v25, %v52_v48  ;;  %v61_v55 = vmul.f32 %v58_v25, %v53_v49  ;;  %v209_v25 = vperm.slane %v347_v12, 0 }
  0x95   :  { %v130_v38 = vmul.f32 %v518_v22, %v124_v16  ;;  %v131_v39 = vmul.f32 %v518_v22, %v125_v17 }
  0x96   :  { %v84_v9 = vadd.f32 %v82_v61, %v60_v54  ;;  %v85_v10 = vadd.f32 %v83_v62, %v61_v55 }
  0x98   :  { %v108_v30 = vadd.f32 %v106_v13, %v84_v9  ;;  %v109_v21 = vadd.f32 %v107_v14, %v85_v10  ;;  %v247_v10 = vld [vmem:[%s621_s3] sm:$0xff] }
  0x99   :  { %v522_v26 = vpop.permute.xlu1 %151 }
  0x9a   :  { %v156_v32 = vsel %vm155_vm4, %v522_v26, %v520_v24  ;;  %v157_v4 = vsel %vm155_vm4, %v520_v24, %v522_v26  ;;  %v224_v3 = vpop.permute.xlu2 %223  ;;  %v233_v24 = vperm.slane %v348_v27, 0  ;;  %v234_v26 = vperm.slane %v348_v27, 1 }
  0x9b   :  { %v537_v33 = vpop.permute.xlu0 %177  ;;  %v165_v40 = vmul.f32 %v161_v11, %v156_v32  ;;  %v166_v41 = vmul.f32 %v162_v15, %v157_v4  ;;  %v132_v46 = vadd.f32 %v130_v38, %v108_v30  ;;  %v248_v11 = vld [vmem:[%s621_s3 + $0x8] sm:$0xff]  ;;  %s455_s3 = smov [#allocation5]  }
  0x9c   :  { %v180_v34 = vsel %vm179_vm5, %v524_v28, %v537_v33  ;;  %v181_v35 = vsel %vm179_vm5, %v537_v33, %v524_v28  ;;  %v133_v28 = vadd.f32 %v131_v39, %v109_v21  ;;  %s326_s2 = sshll.u32 %s455_s3, 4  ;;  %s327_s2 = int_to_ptr.vmem [resolvable:$true] %s326_s2 }
  0x9d   :  { %v189_v44 = vmul.f32 %v185_v18, %v180_v34  ;;  %v190_v45 = vmul.f32 %v186_v19, %v181_v35 }
  0xa1   :  { %v531_v31 = vpop.permute.xlu1 %144 }
  0xa2   :  { %v147_v42 = vmul.f32 %v531_v31, %v141_v23  ;;  %v148_v43 = vmul.f32 %v531_v31, %v142_v20 }
  0xa3   :  { %v202_v8 = vpop.permute.xlu0 %201 }
  0xa4   :  { %v204_v33 = vsel %vm203_vm6, %v547_v50, %v202_v8  ;;  %v205_v22 = vsel %vm203_vm6, %v202_v8, %v547_v50  ;;  %v149_v52 = vadd.f32 %v147_v42, %v132_v46  ;;  %v150_v53 = vadd.f32 %v148_v43, %v133_v28  ;;  %v241_v50 = vpop.permute.xlu2 %240 }
  0xa5   :  { %v213_v56 = vmul.f32 %v209_v25, %v204_v33  ;;  %v214_v58 = vmul.f32 %v210_v36, %v205_v22 }
  0xaa   :  { %v169_v57 = vpop.permute.xlu1 %168 }
  0xab   :  { %v171_v47 = vmul.f32 %v169_v57, %v165_v40  ;;  %v172_v48 = vmul.f32 %v169_v57, %v166_v41  ;;  %v226_v49 = vpop.permute.xlu0 %225 }
  0xac   :  { %v228_v51 = vsel %vm227_vm7, %v224_v3, %v226_v49  ;;  %v229_v31 = vsel %vm227_vm7, %v226_v49, %v224_v3 }
  0xad   :  { %v173_v59 = vadd.f32 %v171_v47, %v149_v52  ;;  %v174_v60 = vadd.f32 %v172_v48, %v150_v53  ;;  %v237_v61 = vmul.f32 %v233_v24, %v228_v51  ;;  %v238_v62 = vmul.f32 %v234_v26, %v229_v31 }
  0xaf   :  { %v243_v5 = vmul.f32 %v241_v50, %v237_v61  ;;  %v244_v6 = vmul.f32 %v241_v50, %v238_v62 }
  0xb3   :  { %v193_v37 = vpop.permute.xlu1 %192  ;;  %v254_v12 = vpop.permute.xlu0 %253 }
  0xb4   :  { %v195_v54 = vmul.f32 %v193_v37, %v189_v44  ;;  %v196_v55 = vmul.f32 %v193_v37, %v190_v45 }
  0xb6   :  { %v197_v57 = vadd.f32 %v195_v54, %v173_v59  ;;  %v198_v0 = vadd.f32 %v196_v55, %v174_v60 }
  0xbc   :  { %v217_v63 = vpop.permute.xlu1 %216 }
  0xbd   :  { %v219_v1 = vmul.f32 %v217_v63, %v213_v56  ;;  %v220_v2 = vmul.f32 %v217_v63, %v214_v58 }
  0xbf   :  { %v221_v29 = vadd.f32 %v219_v1, %v197_v57  ;;  %v222_v7 = vadd.f32 %v220_v2, %v198_v0 }
  0xc1   :  { %v245_v8 = vadd.f32 %v243_v5, %v221_v29  ;;  %v246_v9 = vadd.f32 %v244_v6, %v222_v7 }
  0xc3   :  { %283 = vmatpush.msra.mxu0 %v245_v8  ;;  %353 = vmatpush.msra.mxu2 %v245_v8 }
  0xc4   :  { %306 = vmatpush.msra.mxu1 %v246_v9  ;;  %354 = vmatpush.msra.mxu3 %v246_v9 }
  0xc5   :  { %349 = vmatmul.msk.f32.vlgmr.msra.gmra.mxu0 %vm261_vm8, %v247_v10  ;;  %350 = vmatmul.msk.f32.vlgmr.msra.gmra.mxu2 %vm261_vm8, %v248_v11  ;;  %v259_v19 = vpop.permute.xlu1 %258 }
  0xc6   :  { %351 = vmatmul.msk.f32.vlgmr.msra.gmra.mxu1 %vm261_vm8, %v247_v10  ;;  %352 = vmatmul.msk.f32.vlgmr.msra.gmra.mxu3 %vm261_vm8, %v248_v11 }
 0x142   :  { %v285_v13 = vpop.f32.mrf.mxu0 }
 0x143   :  { %v286_v14 = vadd.f32 %v285_v13, %v254_v12  ;;  %v308_v15 = vpop.f32.mrf.mxu1 }
 0x144   :  { %v309_v16 = vadd.f32 %v308_v15, %v254_v12 }
 0x145   :  { %v314_v17 = vmax.f32 %v286_v14, 0.0 }
 0x146   :  { %v315_v18 = vmax.f32 %v309_v16, 0.0 }
 0x147   :  { %318 = vst [vmem:[#allocation5] sm:$0xff] %v314_v17 }
 0x148   :  { %319 = vst [vmem:[#allocation5 + $0x8] sm:$0xff] %v315_v18  ;;  %v288_v20 = vpop.f32.mrf.mxu2 }
 0x149   :  { %v289_v23 = vadd.f32 %v288_v20, %v259_v19  ;;  %v311_v25 = vpop.f32.mrf.mxu3 }
 0x14a   :  { %v312_v27 = vadd.f32 %v311_v25, %v259_v19 }
 0x14b   :  { %v316_v30 = vmax.f32 %v289_v23, 0.0 }
 0x14c   :  { %v317_v21 = vmax.f32 %v312_v27, 0.0 }
 0x14d   :  { %320 = vst [vmem:[#allocation5 + $0x10] sm:$0xff] %v316_v30 }
 0x14e   :  { %321 = vst [vmem:[#allocation5 + $0x18] sm:$0xff] %v317_v21 }
 0x14f   :  { %334 = dma.vmem_to_hbm [thread:$0]  %s327_s2, 512, %s329_s7, [#allocation4], %s456_s8, %s456_s8, %s441_s23  }
 0x150   :  { %435 = dma.done.wait [#allocation4], 512  }
 0x151   :  { %436 = vsyncadd [#allocation4], 4294966784 }
 0x152   :  { %339 = vsyncpa [#allocation3], 1 }
 0x153   :  { %340 = vsyncpa [#allocation4], 1 }

</bundles_post_ra>
